<compile_context>
chip_gen: v7x
topology: tpu7x:2x2x1
jax: 0.10.0
libtpu: 0.0.40
codegen_flags: <defaults>
</compile_context>

<pallas_src>
import functools

import jax
import jax.numpy as jnp
from jax import lax
from jax.experimental import pallas as pl
from jax.experimental.pallas import tpu as pltpu


# ---------------------------------------------------------------------------
# Generic "matmul + bias" kernel (used for the hoisted input projection and
# the hoisted decoder).  At these sizes a single full block suffices; for
# long sequences one would tile the M (= S*B) dimension with a grid.
# ---------------------------------------------------------------------------
def _matmul_bias_kernel(x_ref, w_ref, b_ref, o_ref):
    o_ref[...] = (jnp.dot(x_ref[...], w_ref[...],
                          preferred_element_type=jnp.float32)
                  + b_ref[...]).astype(o_ref.dtype)


def _matmul_bias(x2d, w, b2d, out_dtype=jnp.float32):
    M, K = x2d.shape
    N = w.shape[1]
    return pl.pallas_call(
        _matmul_bias_kernel,
        out_shape=jax.ShapeDtypeStruct((M, N), out_dtype),
        grid=(1,),
        in_specs=[pl.BlockSpec((M, K), lambda i: (0, 0)),
                  pl.BlockSpec((K, N), lambda i: (0, 0)),
                  pl.BlockSpec((1, N), lambda i: (0, 0))],
        out_specs=pl.BlockSpec((M, N), lambda i: (0, 0)),
    )(x2d, w, b2d)


# ---------------------------------------------------------------------------
# Sequential LSTM recurrence kernel.  Grid iterates over time blocks of T_b
# steps; h/c state lives in VMEM scratch and is carried across grid steps
# (time axis marked "arbitrary").  Per step:
#   layer 0 :  gates = xproj[t] + h_prev @ Whh0^T          (1 matmul)
#   layer l :  gates = x @ Wih_l^T + h_prev @ Whh_l^T + b  (2 matmuls)
# Emits the top-layer hidden per step; final (h, c) written on the last step.
# ---------------------------------------------------------------------------
def _lstm_recurrence_kernel(num_layers, hidden_size, t_block, *refs):
    L, H, Tb = num_layers, hidden_size, t_block
    n_in = 3 + 1 + 3 * (L - 1)
    xproj_ref, h0_ref, c0_ref = refs[0:3]
    whh0_ref = refs[3]                      # (H, 4H)
    deep_refs = refs[4:n_in]                # per layer l>=1: Wih^T, Whh^T, b
    y_ref, h_out_ref, c_out_ref = refs[n_in:n_in + 3]
    h_scr, c_scr = refs[n_in + 3:]          # VMEM scratch (L, B, H)

    tb = pl.program_id(0)

    @pl.when(tb == 0)
    def _():
        h_scr[...] = h0_ref[...]
        c_scr[...] = c0_ref[...]

    # Gate lane mask, hoisted out of the time loop.  Gate order along the 4H
    # axis is i | f | g | o; g uses tanh, the rest sigmoid.  Using
    # sigmoid(x) = 0.5 * (tanh(x/2) + 1) keeps the transcendental full-width
    # (one EUP tanh over 4H lanes) plus cheap VPU mul/add + select.
    lane = lax.broadcasted_iota(jnp.int32, (1, 4 * H), 1)
    is_g = jnp.logical_and(lane >= 2 * H, lane < 3 * H)
    pre_scale = jnp.where(is_g, 1.0, 0.5).astype(jnp.float32)

    def lstm_cell(gates, c_prev):
        th = jnp.tanh(gates * pre_scale)
        act = jnp.where(is_g, th, 0.5 * th + 0.5)
        i_g = act[:, 0 * H:1 * H]
        f_g = act[:, 1 * H:2 * H]
        g_g = act[:, 2 * H:3 * H]
        o_g = act[:, 3 * H:4 * H]
        c_new = f_g * c_prev + i_g * g_g
        h_new = o_g * jnp.tanh(c_new)
        return h_new, c_new

    def step(i, carry):
        # ---- layer 0 (input projection already folded in) ----
        h_prev = h_scr[0]
        c_prev = c_scr[0]
        gates = xproj_ref[i] + jnp.dot(
            h_prev.astype(whh0_ref.dtype), whh0_ref[...],
            preferred_element_type=jnp.float32)
        h_new, c_new = lstm_cell(gates, c_prev)
        h_scr[0] = h_new
        c_scr[0] = c_new
        x = h_new
        # ---- deeper layers ----
        for l in range(1, L):
            wih = deep_refs[3 * (l - 1)][...]        # (H, 4H)
            whh = deep_refs[3 * (l - 1) + 1][...]    # (H, 4H)
            b = deep_refs[3 * (l - 1) + 2][...]      # (1, 4H)
            h_prev = h_scr[l]
            c_prev = c_scr[l]
            gates = (jnp.dot(x.astype(wih.dtype), wih,
                             preferred_element_type=jnp.float32)
                     + jnp.dot(h_prev.astype(whh.dtype), whh,
                               preferred_element_type=jnp.float32)
                     + b)
            h_new, c_new = lstm_cell(gates, c_prev)
            h_scr[l] = h_new
            c_scr[l] = c_new
            x = h_new
        y_ref[i] = x.astype(y_ref.dtype)
        return carry

    lax.fori_loop(0, Tb, step, 0, unroll=True)

    @pl.when(tb == pl.num_programs(0) - 1)
    def _():
        h_out_ref[...] = h_scr[...]
        c_out_ref[...] = c_scr[...]


def _full_spec(shape):
    nd = len(shape)
    return pl.BlockSpec(shape, lambda t, _nd=nd: (0,) * _nd)


# ---------------------------------------------------------------------------
# Forward pass: Embedding -> LSTM -> Linear.
# ---------------------------------------------------------------------------
def rnn_forward(input_seq, hidden_state, params, *, t_block=8,
                compute_dtype=jnp.float32):
    h0, c0 = hidden_state
    h0 = h0.astype(jnp.float32)
    c0 = c0.astype(jnp.float32)

    # Embedding lookup: tiny data-dependent row gather, kept as JAX glue.
    x = jnp.take(params["embedding"], input_seq, axis=0)     # (S, B, V)
    S, B, V = x.shape
    L, _, H = h0.shape
    O = params["w_dec"].shape[0]

    # ---- hoisted layer-0 input projection: (S*B, V) @ (V, 4H) + b0 ----
    wih0_t = params["w_ih"][0].T.astype(compute_dtype)        # (V, 4H)
    b0 = (params["b_ih"][0] + params["b_hh"][0]).reshape(1, 4 * H)
    xproj = _matmul_bias(x.reshape(S * B, V).astype(compute_dtype),
                         wih0_t, b0.astype(jnp.float32))
    xproj = xproj.reshape(S, B, 4 * H)                        # (S, B, 4H) f32

    # ---- recurrence weights (grid-invariant inputs) ----
    layer_inputs = [params["w_hh"][0].T.astype(compute_dtype)]        # (H, 4H)
    for l in range(1, L):
        layer_inputs += [
            params["w_ih"][l].T.astype(compute_dtype),                # (H, 4H)
            params["w_hh"][l].T.astype(compute_dtype),                # (H, 4H)
            (params["b_ih"][l] + params["b_hh"][l])
            .reshape(1, 4 * H).astype(jnp.float32),
        ]

    # Timesteps per grid step: largest divisor of S not exceeding t_block.
    Tb = max(1, min(t_block, S))
    while S % Tb:
        Tb -= 1

    in_specs = ([pl.BlockSpec((Tb, B, 4 * H), lambda t: (t, 0, 0)),
                 _full_spec(h0.shape), _full_spec(c0.shape)]
                + [_full_spec(a.shape) for a in layer_inputs])
    out_specs = [pl.BlockSpec((Tb, B, H), lambda t: (t, 0, 0)),
                 _full_spec(h0.shape), _full_spec(c0.shape)]
    out_shape = [jax.ShapeDtypeStruct((S, B, H), jnp.float32),
                 jax.ShapeDtypeStruct((L, B, H), jnp.float32),
                 jax.ShapeDtypeStruct((L, B, H), jnp.float32)]

    kernel = functools.partial(_lstm_recurrence_kernel, L, H, Tb)
    y, h_n, c_n = pl.pallas_call(
        kernel,
        out_shape=out_shape,
        grid_spec=pltpu.PrefetchScalarGridSpec(
            num_scalar_prefetch=0,
            grid=(S // Tb,),
            in_specs=in_specs,
            out_specs=out_specs,
            scratch_shapes=[pltpu.VMEM((L, B, H), jnp.float32),
                            pltpu.VMEM((L, B, H), jnp.float32)],
        ),
        compiler_params=pltpu.CompilerParams(
            dimension_semantics=("arbitrary",)),
    )(xproj, h0, c0, *layer_inputs)

    # ---- hoisted decoder: (S*B, H) @ (H, O) + b ----
    wdec_t = params["w_dec"].T.astype(compute_dtype)          # (H, O)
    bdec = params["b_dec"].reshape(1, O).astype(jnp.float32)
    out = _matmul_bias(y.reshape(S * B, H).astype(compute_dtype),
                       wdec_t, bdec).reshape(S, B, O)
    return out, (h_n, c_n)


# ---------------------------------------------------------------------------
# Parameter init and pure-JAX reference (mirrors PyTorch LSTM semantics).
# ---------------------------------------------------------------------------
def init_params(key, input_size, output_size, hidden_size, num_layers):
    V, O, H, L = input_size, output_size, hidden_size, num_layers
    ks = jax.random.split(key, 3 + 4 * L)
    stdv = 1.0 / jnp.sqrt(jnp.float32(H))
    params = {
        "embedding": jax.random.normal(ks[0], (V, V), jnp.float32),
        "w_dec": jax.random.uniform(ks[1], (O, H), jnp.float32, -stdv, stdv),
        "b_dec": jax.random.uniform(ks[2], (O,), jnp.float32, -stdv, stdv),
        "w_ih": [], "w_hh": [], "b_ih": [], "b_hh": [],
    }
    for l in range(L):
        feat = V if l == 0 else H
        k0, k1, k2, k3 = ks[3 + 4 * l:3 + 4 * (l + 1)]
        params["w_ih"].append(jax.random.uniform(k0, (4 * H, feat), jnp.float32, -stdv, stdv))
        params["w_hh"].append(jax.random.uniform(k1, (4 * H, H), jnp.float32, -stdv, stdv))
        params["b_ih"].append(jax.random.uniform(k2, (4 * H,), jnp.float32, -stdv, stdv))
        params["b_hh"].append(jax.random.uniform(k3, (4 * H,), jnp.float32, -stdv, stdv))
    return params


def ref_forward(input_seq, hidden_state, params):
    h, c = hidden_state
    x = params["embedding"][input_seq]                        # (S, B, V)
    S, L = x.shape[0], h.shape[0]
    h = [h[l] for l in range(L)]
    c = [c[l] for l in range(L)]
    outs = []
    for t in range(S):
        inp = x[t]
        for l in range(L):
            gates = (inp @ params["w_ih"][l].T + params["b_ih"][l]
                     + h[l] @ params["w_hh"][l].T + params["b_hh"][l])
            i_g, f_g, g_g, o_g = jnp.split(gates, 4, axis=-1)
            i_g = jax.nn.sigmoid(i_g)
            f_g = jax.nn.sigmoid(f_g)
            g_g = jnp.tanh(g_g)
            o_g = jax.nn.sigmoid(o_g)
            c[l] = f_g * c[l] + i_g * g_g
            h[l] = o_g * jnp.tanh(c[l])
            inp = h[l]
        outs.append(inp @ params["w_dec"].T + params["b_dec"])
    return jnp.stack(outs), (jnp.stack(h), jnp.stack(c))


if __name__ == "__main__":
    V, O, H, L = 16, 16, 32, 2        # input_size, output_size, hidden_size, num_layers
    S, B = 8, 2                       # seq_len, batch

    key = jax.random.PRNGKey(0)
    k_p, k_ids, k_h, k_c = jax.random.split(key, 4)
    params = init_params(k_p, V, O, H, L)

    input_seq = jax.random.randint(k_ids, (S, B), 0, V, dtype=jnp.int32)
    h0 = jax.random.normal(k_h, (L, B, H), jnp.float32)
    c0 = jax.random.normal(k_c, (L, B, H), jnp.float32)

    # t_block=4 -> grid of 2 time blocks, exercising the cross-grid-step
    # state carry (fp32 compute keeps parity with the fp32 reference; pass
    # compute_dtype=jnp.bfloat16 for MXU-rate operands on real workloads).
    out, (h_n, c_n) = rnn_forward(input_seq, (h0, c0), params, t_block=4)
    jax.block_until_ready((out, h_n, c_n))

    out_r, (h_r, c_r) = ref_forward(input_seq, (h0, c0), params)
    assert jnp.allclose(out, out_r, atol=5e-4, rtol=5e-4)
    assert jnp.allclose(h_n, h_r, atol=5e-4, rtol=5e-4)
    assert jnp.allclose(c_n, c_r, atol=5e-4, rtol=5e-4)

    print("KERNEL_OK")
</pallas_src>

<mosaic_0001>
module attributes {stable_mosaic.version = 11 : i64} {
  func.func @_matmul_bias_kernel(%arg0: i32, %arg1: memref<16x16xf32, #tpu.memory_space<vmem>>, %arg2: memref<16x128xf32, #tpu.memory_space<vmem>>, %arg3: memref<1x128xf32, #tpu.memory_space<vmem>>, %arg4: memref<16x128xf32, #tpu.memory_space<vmem>>) attributes {dimension_semantics = [#tpu.dimension_semantics<arbitrary>], iteration_bounds = array<i64: 1>, scalar_prefetch = 0 : i64, scratch_operands = 0 : i64, tpu.core_type = #tpu.core_type<tc>, window_params = [{pipeline_mode = #tpu.pipeline_mode<synchronous>, transform_indices = @transform_0, window_bounds = array<i64: 16, 16>}, {pipeline_mode = #tpu.pipeline_mode<synchronous>, transform_indices = @transform_1, window_bounds = array<i64: 16, 128>}, {pipeline_mode = #tpu.pipeline_mode<synchronous>, transform_indices = @transform_2, window_bounds = array<i64: 1, 128>}, {pipeline_mode = #tpu.pipeline_mode<synchronous>, transform_indices = @transform_3, window_bounds = array<i64: 16, 128>}]} {
    %c0 = arith.constant 0 : index
    %c0_0 = arith.constant 0 : index
    %0 = vector.load %arg1[%c0, %c0_0] : memref<16x16xf32, #tpu.memory_space<vmem>>, vector<16x16xf32>
    %c0_1 = arith.constant 0 : index
    %c0_2 = arith.constant 0 : index
    %1 = vector.load %arg2[%c0_1, %c0_2] : memref<16x128xf32, #tpu.memory_space<vmem>>, vector<16x128xf32>
    %cst = arith.constant dense<0.000000e+00> : vector<16x128xf32>
    %2 = tpu.matmul %0, %1, %cst {dimension_numbers = #tpu.dot_dimension_numbers<[1], [0], [0], [1], [0, 0, 1, 1], [], []>} : vector<16x16xf32>, vector<16x128xf32>, vector<16x128xf32> -> vector<16x128xf32>
    %c0_3 = arith.constant 0 : index
    %c0_4 = arith.constant 0 : index
    %3 = vector.load %arg3[%c0_3, %c0_4] : memref<1x128xf32, #tpu.memory_space<vmem>>, vector<1x128xf32>
    %4 = vector.broadcast %3 : vector<1x128xf32> to vector<16x128xf32>
    %5 = arith.addf %2, %4 : vector<16x128xf32>
    %c0_5 = arith.constant 0 : index
    %c0_6 = arith.constant 0 : index
    %6 = vector.load %arg4[%c0_5, %c0_6] : memref<16x128xf32, #tpu.memory_space<vmem>>, vector<16x128xf32>
    tpu.vector_store %arg4[%c0_5, %c0_6], %5 {strides = array<i32>} : memref<16x128xf32, #tpu.memory_space<vmem>>, vector<16x128xf32>,
    return
  }
  func.func @transform_0(%arg0: i32) -> (i32, i32) {
    %c0_i32 = arith.constant 0 : i32
    %c0_i32_0 = arith.constant 0 : i32
    %c0_i32_1 = arith.constant 0 : i32
    return %c0_i32, %c0_i32_0 : i32, i32
  }
  func.func @transform_1(%arg0: i32) -> (i32, i32) {
    %c0_i32 = arith.constant 0 : i32
    %c0_i32_0 = arith.constant 0 : i32
    %c0_i32_1 = arith.constant 0 : i32
    return %c0_i32, %c0_i32_0 : i32, i32
  }
  func.func @transform_2(%arg0: i32) -> (i32, i32) {
    %c0_i32 = arith.constant 0 : i32
    %c0_i32_0 = arith.constant 0 : i32
    %c0_i32_1 = arith.constant 0 : i32
    return %c0_i32, %c0_i32_0 : i32, i32
  }
  func.func @transform_3(%arg0: i32) -> (i32, i32) {
    %c0_i32 = arith.constant 0 : i32
    %c0_i32_0 = arith.constant 0 : i32
    %c0_i32_1 = arith.constant 0 : i32
    return %c0_i32, %c0_i32_0 : i32, i32
  }
}

</mosaic_0001>

<bundles_post_ra>
// kernel: tpu_custom_call.1
= control target key start
LH: loop header
LB: loop body
LE: loop exit
PB: predicated region body
PF: predicated region fallthrough
CT: control target
= control target key end

     0   :  { %8 = vsyncpa [#allocation3], 0  ;;  %s324_s0 = inlined_call_operand.hbm [shape: f32[16,16], index: 0, kind: input, shape index: {}]   ;;  %s325_s1 = inlined_call_operand.hbm [shape: f32[16,128], index: 1, kind: input, shape index: {}]   ;;  %s326_s2 = inlined_call_operand.vmem [shape: f32[1,128], index: 2, kind: input, shape index: {}]   ;;  %s327_s3 = inlined_call_operand.hbm [shape: f32[16,128], index: 3, kind: output, shape index: {}]  }
   0x1   :  { %9 = vsyncpa [#allocation6], 0 }
   0x2   :  { %10 = vsyncpa [#allocation4], 0  ;;  %s251_s12 = smov [#allocation2]   ;;  %s179_s16 = scalar_lea.hbm %s324_s0, 256 }
   0x3   :  { %s16_s13 = sshll.u32 %s251_s12, 4  ;;  %p180_p0 = scmp.ne.s32.totalorder %s324_s0, %s179_s16  ;;  %s17_s13 = int_to_ptr.vmem [resolvable:$true] %s16_s13 }
   0x4   :  { %p183_p1 = scmp.lt.u32.totalorder %s179_s16, %s324_s0 }
   0x6   :  { %p185_p2 = pnand %p183_p1, %p180_p0 }
   0x8   :  { %188 = shalt.err (!%p185_p2)
}
   0x9   :  { %s189_s21 = scalar_lea.vmem %s17_s13, 256  ;;  %p194_p4 = scmp.lt.s32.totalorder %s17_s13, %s17_s13 }
   0xa   :  { %p190_p3 = scmp.ne.s32.totalorder %s17_s13, %s189_s21  ;;  %p195_p5 = scmp.lt.s32.totalorder %s189_s21, %s189_s21 }
   0xc   :  { %p196_p6 = por %p195_p5, %p194_p4 }
   0xe   :  { %p197_p7 = pnand %p196_p6, %p190_p3 }
  0x10   :  { %200 = shalt.err (!%p197_p7)
}
  0x11   :  { %s252_s22 = smov 128   ;;  %s253_s23 = smov 8  }
  0x12   :  { %22 = dma.hbm_to_vmem [thread:$0]  %s324_s0, 256, %s17_s13, [#allocation3], %s252_s22, %s252_s22, %s253_s23  }
  0x13   :  { %s254_s26 = smov [#allocation5]   ;;  %s201_s30 = scalar_lea.hbm %s325_s1, 256 }
  0x14   :  { %s28_s27 = sshll.u32 %s254_s26, 4  ;;  %p202_p8 = scmp.ne.s32.totalorder %s325_s1, %s201_s30  ;;  %s29_s27 = int_to_ptr.vmem [resolvable:$true] %s28_s27 }
  0x15   :  { %p205_p9 = scmp.lt.u32.totalorder %s201_s30, %s325_s1 }
  0x17   :  { %p207_p10 = pnand %p205_p9, %p202_p8 }
  0x19   :  { %210 = shalt.err (!%p207_p10)
}
  0x1a   :  { %s211_s8 = scalar_lea.vmem %s29_s27, 256  ;;  %p216_p12 = scmp.lt.s32.totalorder %s29_s27, %s29_s27 }
  0x1b   :  { %p212_p11 = scmp.ne.s32.totalorder %s29_s27, %s211_s8  ;;  %p217_p13 = scmp.lt.s32.totalorder %s211_s8, %s211_s8 }
  0x1d   :  { %p218_p0 = por %p217_p13, %p216_p12 }
  0x1f   :  { %p219_p1 = pnand %p218_p0, %p212_p11 }
  0x21   :  { %222 = shalt.err (!%p219_p1)
}
  0x22   :  { %34 = dma.hbm_to_vmem [thread:$0]  %s325_s1, 256, %s29_s27, [#allocation6], %s252_s22, %s252_s22, %s253_s23  }
  0x23   :  { %245 = dma.done.wait [#allocation3], 256  }
  0x24   :  { %246 = vsyncadd [#allocation3], 4294967040 }
  0x25   :  { %247 = dma.done.wait [#allocation6], 256  }
  0x26   :  { %248 = vsyncadd [#allocation6], 4294967040  ;;  %vm54_vm0 = vcmask 130048   ;;  %v45_v0 = vld [vmem:[#allocation5] sm:$0xff]  ;;  %v46_v1 = vld [vmem:[#allocation5 + $0x8] sm:$0xff]  ;;  %s255_s12 = smov [#allocation7]  }
  0x27   :  { %v43_v2 = vld [vmem:[#allocation2] sm:$0xff]  ;;  %v170_v3 = vpack.c.bf16 %v46_v1, %v45_v0  ;;  %v44_v4 = vld [vmem:[#allocation2 + $0x8] sm:$0xff]  ;;  %s143_s1 = sshll.u32 %s255_s12, 4  ;;  %s144_s1 = int_to_ptr.vmem [resolvable:$true] %s143_s1 }
  0x28   :  { %167 = vmatprep.mubr.msk.f32.mxu0 %vm54_vm0, %v43_v2  ;;  %v156_v5 = vld [vmem:[%s326_s2] ss:$0 sm:$0xff]  ;;  %s223_s13 = scalar_lea.vmem %s144_s1, 256  ;;  %p228_p3 = scmp.lt.s32.totalorder %s144_s1, %s144_s1 }
  0x29   :  { %171 = vmatprep.subr.bf16.mxu0 %v170_v3  ;;  %p224_p2 = scmp.ne.s32.totalorder %s144_s1, %s223_s13  ;;  %p229_p4 = scmp.lt.s32.totalorder %s223_s13, %s223_s13 }
  0x2a   :  { %173 = vmatpush3.bf16.msra.mxu0 %v170_v3 }
  0x2b   :  { %p230_p5 = por %p229_p4, %p228_p3 }
  0x2d   :  { %168 = vmatmul.mubr.msk.f32.vlgmr.msra.gmra.mrb[0].mxu0 %vm54_vm0, %v44_v4  ;;  %p231_p6 = pnand %p230_p5, %p224_p2 }
 0x100   :  { %v169_v6 = vpop.f32.mrb[0].mxu0 }
 0x101   :  { %v133_v7 = vadd.f32 %v169_v6, %v156_v5  ;;  %v127_v8 = vpop.f32.mrb[1].mxu0 }
 0x102   :  { %v128_v9 = vadd.f32 %v156_v5, %v127_v8 }
 0x103   :  { %137 = vst [vmem:[#allocation7 + $0x8] sm:$0xff] %v133_v7 }
 0x104   :  { %136 = vst [vmem:[#allocation7] sm:$0xff] %v128_v9 }
 0x105   :  { %234 = shalt.err (!%p231_p6)
}
 0x106   :  { %s235_s2 = scalar_lea.hbm %s327_s3, 256 }
 0x107   :  { %p236_p7 = scmp.ne.s32.totalorder %s327_s3, %s235_s2  ;;  %p239_p8 = scmp.lt.u32.totalorder %s235_s2, %s327_s3 }
 0x109   :  { %p241_p9 = pnand %p239_p8, %p236_p7 }
 0x10b   :  { %244 = shalt.err (!%p241_p9)
}
 0x10c   :  { %149 = dma.vmem_to_hbm [thread:$0]  %s144_s1, 256, %s327_s3, [#allocation4], %s252_s22, %s252_s22, %s253_s23  }
 0x10d   :  { %249 = dma.done.wait [#allocation4], 256  }
 0x10e   :  { %250 = vsyncadd [#allocation4], 4294967040 }
 0x10f   :  { %153 = vsyncpa [#allocation3], 1 }
 0x110   :  { %154 = vsyncpa [#allocation6], 1 }
 0x111   :  { %155 = vsyncpa [#allocation4], 1 }

</bundles_post_ra>
